<compile_context>
chip_gen: v5e
topology: v5e:2x2
jax: 0.10.0
libtpu: 0.0.40
codegen_flags: <defaults>
</compile_context>

<pallas_src>
import functools

import jax
import jax.numpy as jnp
from jax import lax
from jax.experimental import pallas as pl
from jax.experimental.pallas import tpu as pltpu


def _round_up(x: int, m: int) -> int:
    return ((x + m - 1) // m) * m


def _device_kind() -> str:
    try:
        return jax.devices()[0].device_kind.lower()
    except Exception:
        return ""


def _default_row_tile() -> int:
    # v6e / v7x: 2x256x256 MXU -> 256-row LHS fills it.  v5e: 4x128x128 -> 128 is enough
    # and 256 only adds vreg/VMEM pressure.
    kind = _device_kind()
    if "v6" in kind or "v7" in kind:
        return 256
    return 128


def _pick_f_tile(fp: int) -> int:
    for cand in (512, 256, 128):
        if fp % cand == 0:
            return cand
    return fp


def _invariant_spec(shape, index_map):
    # Grid-invariant input: single buffer (constant index_map never needs a 2nd buffer).
    try:
        return pl.BlockSpec(shape, index_map, pipeline_mode=pl.Buffered(1))
    except TypeError:  # older signature without pipeline_mode kwarg
        return pl.BlockSpec(shape, index_map)


def _residual_ffn_kernel(x_ref, alpha_ref, beta_ref, b2_ref, w1_ref, b1_ref, w2_ref,
                         o_ref, acc_ref, normed_ref, *, eps: float, d_actual: int,
                         mxu_dtype):
    f = pl.program_id(1)
    nf = pl.num_programs(1)

    # ---- per-row-tile prologue: LayerNorm once, init accumulator with b2 ----
    @pl.when(f == 0)
    def _():
        x = x_ref[...].astype(jnp.float32)           # (tm, Dp); padded lanes are zero
        dp = x.shape[-1]
        # Padded lanes of x are zero, so a plain lane-sum over Dp equals the D-lane sum.
        mean = jnp.sum(x, axis=-1, keepdims=True) * jnp.float32(1.0 / d_actual)
        diff = x - mean
        if dp != d_actual:  # compile-time guard: mask only when lanes are padded
            lane = lax.broadcasted_iota(jnp.int32, x.shape, dimension=1)
            diff = jnp.where(lane < d_actual, diff, 0.0)
        # Unbiased variance (torch.std default), eps added to std (not variance).
        var = jnp.sum(diff * diff, axis=-1, keepdims=True) * jnp.float32(
            1.0 / (d_actual - 1))
        inv = pl.reciprocal(jnp.sqrt(var) + jnp.float32(eps), approx=False)
        normed = alpha_ref[...] * (diff * inv) + beta_ref[...]
        normed_ref[...] = normed.astype(normed_ref.dtype)
        # Fold b2 into the accumulator init (saves the epilogue add / broadcast).
        acc_ref[...] = jnp.broadcast_to(b2_ref[...], acc_ref.shape).astype(jnp.float32)

    # ---- FeedForwardBlock, tiled over d_ff: linear_1 -> relu -> linear_2 (accumulate) ----
    h = jnp.dot(normed_ref[...], w1_ref[...],
                preferred_element_type=jnp.float32) + b1_ref[...]
    h = jnp.maximum(h, 0.0)
    # TODO(synk): dropout (inside the FFN and on the residual branch) is identity (eval
    # mode); a training-mode variant would use pltpu.prng_seed + pltpu.stateful_bernoulli.
    acc_ref[...] += jnp.dot(h.astype(mxu_dtype), w2_ref[...],
                            preferred_element_type=jnp.float32)

    # ---- epilogue: residual add (skip path exact), cast, store ----
    @pl.when(f == nf - 1)
    def _():
        o_ref[...] = (x_ref[...].astype(jnp.float32) + acc_ref[...]).astype(o_ref.dtype)


def _maybe_pad2d(a, rows, cols):
    if a.shape == (rows, cols):
        return a
    return jnp.pad(a, ((0, rows - a.shape[0]), (0, cols - a.shape[1])))


def residual_connection_ffn(x, alpha, beta, w1, b1, w2, b2, *, eps=1e-6, tm=None,
                            mxu_dtype=jnp.bfloat16):
    """x: (B, S, D).  Returns x + FFN(LayerNorm(x)); dropout is eval-mode identity.

    Weights are pre-transposed: w1 = linear_1.weight.T (D, F), w2 = linear_2.weight.T (F, D).
    mxu_dtype=jnp.float32 gives a bit-accurate (no bf16) MXU path for validation.
    """
    B, S, D = x.shape
    F = w1.shape[1]
    M = B * S

    if tm is None:
        tm = _default_row_tile()
    # Never pad M beyond what one tile needs; keep the sublane (8) constraint.
    tm = max(8, min(tm, _round_up(M, 8)))

    Dp = _round_up(D, 128)      # lane-dense last dims -> unmasked vst on the output path
    Fp = _round_up(F, 128)
    Mp = _round_up(M, tm)
    tf = _pick_f_tile(Fp)

    # ---- operands: native-dtype activation stream, pad only when actually needed ----
    x2 = _maybe_pad2d(x.reshape(M, D), Mp, Dp)                       # native dtype
    alpha2 = _maybe_pad2d(alpha.reshape(1, D).astype(jnp.float32), 1, Dp)
    beta2 = _maybe_pad2d(beta.reshape(1, D).astype(jnp.float32), 1, Dp)
    w1p = _maybe_pad2d(w1, Dp, Fp).astype(mxu_dtype)
    w2p = _maybe_pad2d(w2, Fp, Dp).astype(mxu_dtype)
    b1p = _maybe_pad2d(b1.reshape(1, F).astype(jnp.float32), 1, Fp)
    b2p = _maybe_pad2d(b2.reshape(1, D).astype(jnp.float32), 1, Dp)

    kernel = functools.partial(_residual_ffn_kernel, eps=eps, d_actual=D,
                               mxu_dtype=mxu_dtype)

    x_bytes = jnp.dtype(x.dtype).itemsize
    w_bytes = jnp.dtype(mxu_dtype).itemsize

    # ---- VMEM budget from actual tile bytes (double-buffered unless Buffered(1)) ----
    vmem_needed = (
        2 * tm * Dp * x_bytes          # x tile
        + 2 * tm * Dp * x_bytes        # out tile
        + 3 * 8 * Dp * 4               # alpha / beta / b2 (single buffer, 8-sublane pad)
        + 2 * Dp * tf * w_bytes        # w1 tile
        + 2 * tf * Dp * w_bytes        # w2 tile
        + 2 * 8 * tf * 4               # b1 tile
        + tm * Dp * 4                  # f32 accumulator scratch
        + tm * Dp * w_bytes            # normed scratch
        + tm * tf * 4                  # h intermediate headroom
    )
    kind = _device_kind()
    vmem_cap = (56 << 20) if "v7" in kind else (100 << 20)   # 64 MiB vs 128 MiB physical
    vmem_limit = min(max(int(vmem_needed * 1.5) + (8 << 20), 16 << 20), vmem_cap)

    n_row_tiles = Mp // tm
    cost = pl.CostEstimate(
        flops=4 * M * D * F,                       # two matmuls, fwd only
        transcendentals=2 * M,                     # sqrt + reciprocal per row
        bytes_accessed=(M * D * x_bytes * 2        # x in + out
                        + n_row_tiles * (Dp * Fp + Fp * Dp) * w_bytes   # weight refetch
                        + (2 * Dp + Fp + Dp) * 4))

    out = pl.pallas_call(
        kernel,
        out_shape=jax.ShapeDtypeStruct((Mp, Dp), x.dtype),
        grid_spec=pltpu.PrefetchScalarGridSpec(
            num_scalar_prefetch=0,
            grid=(n_row_tiles, Fp // tf),           # rows parallel, d_ff reduction last
            in_specs=[
                pl.BlockSpec((tm, Dp), lambda i, f: (i, 0)),     # x rows (native dtype)
                _invariant_spec((1, Dp), lambda i, f: (0, 0)),   # alpha
                _invariant_spec((1, Dp), lambda i, f: (0, 0)),   # beta
                _invariant_spec((1, Dp), lambda i, f: (0, 0)),   # b2
                pl.BlockSpec((Dp, tf), lambda i, f: (0, f)),     # w1 slice
                pl.BlockSpec((1, tf), lambda i, f: (0, f)),      # b1 slice
                pl.BlockSpec((tf, Dp), lambda i, f: (f, 0)),     # w2 slice
            ],
            out_specs=pl.BlockSpec((tm, Dp), lambda i, f: (i, 0)),
            scratch_shapes=[
                pltpu.VMEM((tm, Dp), jnp.float32),   # accumulator (init = b2)
                pltpu.VMEM((tm, Dp), mxu_dtype),     # LayerNorm(x) reused across f
            ]),
        compiler_params=pltpu.CompilerParams(
            dimension_semantics=("parallel", "arbitrary"),
            vmem_limit_bytes=vmem_limit),
        cost_estimate=cost,
    )(x2, alpha2, beta2, b2p, w1p, b1p, w2p)

    if (Mp, Dp) != (M, D):
        out = out[:M, :D]
    return out.reshape(B, S, D)


if __name__ == "__main__":
    # Small shapes consistent with the transformer module.
    batch, seq, d_model, d_ff = 2, 8, 32, 64

    key = jax.random.PRNGKey(0)
    kx, kw1, kb1, kw2, kb2 = jax.random.split(key, 5)

    x = jax.random.normal(kx, (batch, seq, d_model), dtype=jnp.float32)

    # LayerNormalization params: alpha=ones, bias=zeros (as in __init__).
    alpha = jnp.ones((d_model,), dtype=jnp.float32)
    beta = jnp.zeros((d_model,), dtype=jnp.float32)

    # FeedForwardBlock params, deterministic init (stored pre-transposed).
    w1 = jax.random.normal(kw1, (d_model, d_ff), dtype=jnp.float32) * 0.05
    b1 = jax.random.normal(kb1, (d_ff,), dtype=jnp.float32) * 0.05
    w2 = jax.random.normal(kw2, (d_ff, d_model), dtype=jnp.float32) * 0.05
    b2 = jax.random.normal(kb2, (d_model,), dtype=jnp.float32) * 0.05

    out = residual_connection_ffn(x, alpha, beta, w1, b1, w2, b2)
    out = jax.block_until_ready(out)

    # Pure-f32 JAX reference.  Kernel uses bf16 MXU operands (f32 accumulation), so the
    # residual-branch error is ~1e-3; tolerance loosened accordingly.
    def ref(x):
        mean = jnp.mean(x, axis=-1, keepdims=True)
        diff = x - mean
        std = jnp.sqrt(jnp.sum(diff * diff, axis=-1, keepdims=True) / (d_model - 1))
        normed = alpha * diff / (std + 1e-6) + beta
        h = jnp.maximum(normed @ w1 + b1, 0.0)
        return x + (h @ w2 + b2)

    assert jnp.allclose(out, ref(x), atol=2e-2, rtol=2e-2), "mismatch vs reference"
    print("KERNEL_OK")
</pallas_src>

<mosaic_0001>
module attributes {stable_mosaic.version = 11 : i64} {
  func.func @_residual_ffn_kernel(%arg0: i32, %arg1: i32, %arg2: memref<16x128xf32, #tpu.memory_space<vmem>>, %arg3: memref<1x128xf32, #tpu.memory_space<vmem>>, %arg4: memref<1x128xf32, #tpu.memory_space<vmem>>, %arg5: memref<1x128xf32, #tpu.memory_space<vmem>>, %arg6: memref<128x128xbf16, #tpu.memory_space<vmem>>, %arg7: memref<1x128xf32, #tpu.memory_space<vmem>>, %arg8: memref<128x128xbf16, #tpu.memory_space<vmem>>, %arg9: memref<16x128xf32, #tpu.memory_space<vmem>>, %arg10: memref<16x128xf32, #tpu.memory_space<vmem>>, %arg11: memref<16x128xbf16, #tpu.memory_space<vmem>>) attributes {dimension_semantics = [#tpu.dimension_semantics<parallel>, #tpu.dimension_semantics<arbitrary>], iteration_bounds = array<i64: 1, 1>, scalar_prefetch = 0 : i64, scratch_operands = 2 : i64, tpu.core_type = #tpu.core_type<tc>, window_params = [{transform_indices = @transform_0, window_bounds = array<i64: 16, 128>}, {pipeline_mode = #tpu.pipeline_mode<synchronous>, transform_indices = @transform_1, window_bounds = array<i64: 1, 128>}, {pipeline_mode = #tpu.pipeline_mode<synchronous>, transform_indices = @transform_2, window_bounds = array<i64: 1, 128>}, {pipeline_mode = #tpu.pipeline_mode<synchronous>, transform_indices = @transform_3, window_bounds = array<i64: 1, 128>}, {transform_indices = @transform_4, window_bounds = array<i64: 128, 128>}, {transform_indices = @transform_5, window_bounds = array<i64: 1, 128>}, {transform_indices = @transform_6, window_bounds = array<i64: 128, 128>}, {transform_indices = @transform_7, window_bounds = array<i64: 16, 128>}]} {
    %c0_i32 = arith.constant 0 : i32
    %0 = arith.cmpi eq, %arg1, %c0_i32 : i32
    %1 = arith.extui %0 : i1 to i32
    %c0_i32_0 = arith.constant 0 : i32
    %2 = arith.cmpi ne, %1, %c0_i32_0 : i32
    scf.if %2 {
      %c0_16 = arith.constant 0 : index
      %c0_17 = arith.constant 0 : index
      %20 = vector.load %arg2[%c0_16, %c0_17] : memref<16x128xf32, #tpu.memory_space<vmem>>, vector<16x128xf32>
      %cst_18 = arith.constant dense<0.000000e+00> : vector<16xf32>
      %21 = vector.multi_reduction <add>, %20, %cst_18 [1] : vector<16x128xf32> to vector<16xf32>
      %22 = vector.shape_cast %21 : vector<16xf32> to vector<16x1xf32>
      %cst_19 = arith.constant 3.125000e-02 : f32
      %23 = vector.broadcast %cst_19 : f32 to vector<16x1xf32>
      %24 = arith.mulf %22, %23 : vector<16x1xf32>
      %25 = vector.broadcast %24 : vector<16x1xf32> to vector<16x128xf32>
      %26 = arith.subf %20, %25 : vector<16x128xf32>
      %27 = tpu.iota {dimensions = array<i32: 1>} : vector<16x128xi32>
      %c32_i32 = arith.constant 32 : i32
      %28 = vector.broadcast %c32_i32 : i32 to vector<16x128xi32>
      %29 = arith.cmpi slt, %27, %28 : vector<16x128xi32>
      %cst_20 = arith.constant 0.000000e+00 : f32
      %30 = vector.broadcast %cst_20 : f32 to vector<16x128xf32>
      %31 = arith.select %29, %26, %30 : vector<16x128xi1>, vector<16x128xf32>
      %32 = arith.mulf %31, %31 : vector<16x128xf32>
      %cst_21 = arith.constant dense<0.000000e+00> : vector<16xf32>
      %33 = vector.multi_reduction <add>, %32, %cst_21 [1] : vector<16x128xf32> to vector<16xf32>
      %34 = vector.shape_cast %33 : vector<16xf32> to vector<16x1xf32>
      %cst_22 = arith.constant 0.0322580636 : f32
      %35 = vector.broadcast %cst_22 : f32 to vector<16x1xf32>
      %36 = arith.mulf %34, %35 : vector<16x1xf32>
      %37 = math.sqrt %36 : vector<16x1xf32>
      %cst_23 = arith.constant 9.99999997E-7 : f32
      %38 = vector.broadcast %cst_23 : f32 to vector<16x1xf32>
      %39 = arith.addf %37, %38 : vector<16x1xf32>
      %40 = tpu.reciprocal %39 : vector<16x1xf32> -> vector<16x1xf32>
      %c0_24 = arith.constant 0 : index
      %c0_25 = arith.constant 0 : index
      %41 = vector.load %arg3[%c0_24, %c0_25] : memref<1x128xf32, #tpu.memory_space<vmem>>, vector<1x128xf32>
      %42 = vector.broadcast %40 : vector<16x1xf32> to vector<16x128xf32>
      %43 = arith.mulf %31, %42 : vector<16x128xf32>
      %44 = vector.broadcast %41 : vector<1x128xf32> to vector<16x128xf32>
      %45 = arith.mulf %44, %43 : vector<16x128xf32>
      %c0_26 = arith.constant 0 : index
      %c0_27 = arith.constant 0 : index
      %46 = vector.load %arg4[%c0_26, %c0_27] : memref<1x128xf32, #tpu.memory_space<vmem>>, vector<1x128xf32>
      %47 = vector.broadcast %46 : vector<1x128xf32> to vector<16x128xf32>
      %48 = arith.addf %45, %47 : vector<16x128xf32>
      %49 = arith.truncf %48 : vector<16x128xf32> to vector<16x128xbf16>
      %c0_28 = arith.constant 0 : index
      %c0_29 = arith.constant 0 : index
      %50 = vector.load %arg11[%c0_28, %c0_29] : memref<16x128xbf16, #tpu.memory_space<vmem>>, vector<16x128xbf16>
      tpu.vector_store %arg11[%c0_28, %c0_29], %49 {strides = array<i32>} : memref<16x128xbf16, #tpu.memory_space<vmem>>, vector<16x128xbf16>,
      %c0_30 = arith.constant 0 : index
      %c0_31 = arith.constant 0 : index
      %51 = vector.load %arg5[%c0_30, %c0_31] : memref<1x128xf32, #tpu.memory_space<vmem>>, vector<1x128xf32>
      %52 = vector.shape_cast %51 : vector<1x128xf32> to vector<1x128xf32>
      %53 = vector.broadcast %52 : vector<1x128xf32> to vector<16x128xf32>
      %c0_32 = arith.constant 0 : index
      %c0_33 = arith.constant 0 : index
      %54 = vector.load %arg10[%c0_32, %c0_33] : memref<16x128xf32, #tpu.memory_space<vmem>>, vector<16x128xf32>
      tpu.vector_store %arg10[%c0_32, %c0_33], %53 {strides = array<i32>} : memref<16x128xf32, #tpu.memory_space<vmem>>, vector<16x128xf32>,
    } else {
    }
    %c0 = arith.constant 0 : index
    %c0_1 = arith.constant 0 : index
    %3 = vector.load %arg11[%c0, %c0_1] : memref<16x128xbf16, #tpu.memory_space<vmem>>, vector<16x128xbf16>
    %c0_2 = arith.constant 0 : index
    %c0_3 = arith.constant 0 : index
    %4 = vector.load %arg6[%c0_2, %c0_3] : memref<128x128xbf16, #tpu.memory_space<vmem>>, vector<128x128xbf16>
    %cst = arith.constant dense<0.000000e+00> : vector<16x128xf32>
    %5 = tpu.matmul %3, %4, %cst {dimension_numbers = #tpu.dot_dimension_numbers<[1], [0], [0], [1], [0, 0, 1, 1], [], []>} : vector<16x128xbf16>, vector<128x128xbf16>, vector<16x128xf32> -> vector<16x128xf32>
    %c0_4 = arith.constant 0 : index
    %c0_5 = arith.constant 0 : index
    %6 = vector.load %arg7[%c0_4, %c0_5] : memref<1x128xf32, #tpu.memory_space<vmem>>, vector<1x128xf32>
    %7 = vector.broadcast %6 : vector<1x128xf32> to vector<16x128xf32>
    %8 = arith.addf %5, %7 : vector<16x128xf32>
    %cst_6 = arith.constant 0.000000e+00 : f32
    %9 = vector.broadcast %cst_6 : f32 to vector<16x128xf32>
    %10 = arith.maximumf %8, %9 : vector<16x128xf32>
    %c0_7 = arith.constant 0 : index
    %c0_8 = arith.constant 0 : index
    %11 = vector.load %arg10[%c0_7, %c0_8] : memref<16x128xf32, #tpu.memory_space<vmem>>, vector<16x128xf32>
    %12 = arith.truncf %10 : vector<16x128xf32> to vector<16x128xbf16>
    %c0_9 = arith.constant 0 : index
    %c0_10 = arith.constant 0 : index
    %13 = vector.load %arg8[%c0_9, %c0_10] : memref<128x128xbf16, #tpu.memory_space<vmem>>, vector<128x128xbf16>
    %cst_11 = arith.constant dense<0.000000e+00> : vector<16x128xf32>
    %14 = tpu.matmul %12, %13, %cst_11 {dimension_numbers = #tpu.dot_dimension_numbers<[1], [0], [0], [1], [0, 0, 1, 1], [], []>} : vector<16x128xbf16>, vector<128x128xbf16>, vector<16x128xf32> -> vector<16x128xf32>
    %15 = arith.addf %11, %14 : vector<16x128xf32>
    %c0_12 = arith.constant 0 : index
    %c0_13 = arith.constant 0 : index
    %16 = vector.load %arg10[%c0_12, %c0_13] : memref<16x128xf32, #tpu.memory_space<vmem>>, vector<16x128xf32>
    tpu.vector_store %arg10[%c0_12, %c0_13], %15 {strides = array<i32>} : memref<16x128xf32, #tpu.memory_space<vmem>>, vector<16x128xf32>,
    %c0_i32_14 = arith.constant 0 : i32
    %17 = arith.cmpi eq, %arg1, %c0_i32_14 : i32
    %18 = arith.extui %17 : i1 to i32
    %c0_i32_15 = arith.constant 0 : i32
    %19 = arith.cmpi ne, %18, %c0_i32_15 : i32
    scf.if %19 {
      %c0_16 = arith.constant 0 : index
      %c0_17 = arith.constant 0 : index
      %20 = vector.load %arg2[%c0_16, %c0_17] : memref<16x128xf32, #tpu.memory_space<vmem>>, vector<16x128xf32>
      %c0_18 = arith.constant 0 : index
      %c0_19 = arith.constant 0 : index
      %21 = vector.load %arg10[%c0_18, %c0_19] : memref<16x128xf32, #tpu.memory_space<vmem>>, vector<16x128xf32>
      %22 = arith.addf %20, %21 : vector<16x128xf32>
      %c0_20 = arith.constant 0 : index
      %c0_21 = arith.constant 0 : index
      %23 = vector.load %arg9[%c0_20, %c0_21] : memref<16x128xf32, #tpu.memory_space<vmem>>, vector<16x128xf32>
      tpu.vector_store %arg9[%c0_20, %c0_21], %22 {strides = array<i32>} : memref<16x128xf32, #tpu.memory_space<vmem>>, vector<16x128xf32>,
    } else {
    }
    return
  }
  func.func @transform_0(%arg0: i32, %arg1: i32) -> (i32, i32) {
    %c0_i32 = arith.constant 0 : i32
    %c0_i32_0 = arith.constant 0 : i32
    return %arg0, %c0_i32 : i32, i32
  }
  func.func @transform_1(%arg0: i32, %arg1: i32) -> (i32, i32) {
    %c0_i32 = arith.constant 0 : i32
    %c0_i32_0 = arith.constant 0 : i32
    %c0_i32_1 = arith.constant 0 : i32
    return %c0_i32, %c0_i32_0 : i32, i32
  }
  func.func @transform_2(%arg0: i32, %arg1: i32) -> (i32, i32) {
    %c0_i32 = arith.constant 0 : i32
    %c0_i32_0 = arith.constant 0 : i32
    %c0_i32_1 = arith.constant 0 : i32
    return %c0_i32, %c0_i32_0 : i32, i32
  }
  func.func @transform_3(%arg0: i32, %arg1: i32) -> (i32, i32) {
    %c0_i32 = arith.constant 0 : i32
    %c0_i32_0 = arith.constant 0 : i32
    %c0_i32_1 = arith.constant 0 : i32
    return %c0_i32, %c0_i32_0 : i32, i32
  }
  func.func @transform_4(%arg0: i32, %arg1: i32) -> (i32, i32) {
    %c0_i32 = arith.constant 0 : i32
    %c0_i32_0 = arith.constant 0 : i32
    return %c0_i32, %arg1 : i32, i32
  }
  func.func @transform_5(%arg0: i32, %arg1: i32) -> (i32, i32) {
    %c0_i32 = arith.constant 0 : i32
    %c0_i32_0 = arith.constant 0 : i32
    return %c0_i32, %arg1 : i32, i32
  }
  func.func @transform_6(%arg0: i32, %arg1: i32) -> (i32, i32) {
    %c0_i32 = arith.constant 0 : i32
    %c0_i32_0 = arith.constant 0 : i32
    return %arg1, %c0_i32 : i32, i32
  }
  func.func @transform_7(%arg0: i32, %arg1: i32) -> (i32, i32) {
    %c0_i32 = arith.constant 0 : i32
    %c0_i32_0 = arith.constant 0 : i32
    return %arg0, %c0_i32 : i32, i32
  }
}

</mosaic_0001>

<bundles_post_ra>
// kernel: tpu_custom_call.1
= control target key start
LH: loop header
LB: loop body
LE: loop exit
PB: predicated region body
PF: predicated region fallthrough
CT: control target
= control target key end

     0   :  { %12 = vsyncpa [#allocation5], 0  ;;  %s740_s0 = inlined_call_operand.hbm [shape: f32[16,128], index: 0, kind: input, shape index: {}]   ;;  %s741_s1 = inlined_call_operand.hbm [shape: f32[1,128], index: 1, kind: input, shape index: {}]   ;;  %s742_s2 = inlined_call_operand.vmem [shape: f32[1,128], index: 2, kind: input, shape index: {}]   ;;  %s743_s3 = inlined_call_operand.vmem [shape: f32[1,128], index: 3, kind: input, shape index: {}]   ;;  %s744_s4 = inlined_call_operand.hbm [shape: bf16[128,128], index: 4, kind: input, shape index: {}]   ;;  %s745_s5 = inlined_call_operand.vmem [shape: f32[1,128], index: 5, kind: input, shape index: {}]   ;;  %s746_s6 = inlined_call_operand.hbm [shape: bf16[128,128], index: 6, kind: input, shape index: {}]   ;;  %s747_s7 = inlined_call_operand.hbm [shape: f32[16,128], index: 7, kind: output, shape index: {}]  }
   0x1   :  { %13 = vsyncpa [#allocation8], 0 }
   0x2   :  { %14 = vsyncpa [#allocation11], 0  ;;  %s34_s26 = sshll.u32 %s741_s1, 4  ;;  %s35_s26 = int_to_ptr.hbm [resolvable:$true] %s34_s26 }
   0x3   :  { %15 = vsyncpa [#allocation6], 0  ;;  %s641_s27 = smov [#allocation7]   ;;  %s20_s8 = sshll.u32 %s740_s0, 4  ;;  %s21_s8 = int_to_ptr.hbm [resolvable:$true] %s20_s8 }
   0x4   :  { %s36_s28 = sshll.u32 %s641_s27, 4  ;;  %s642_s9 = smov [#allocation4]   ;;  %s37_s28 = int_to_ptr.vmem [resolvable:$true] %s36_s28 }
   0x5   :  { %39 = dma.hbm_to_vmem [thread:$0]  %s35_s26, 16, %s37_s28, [#allocation8]  }
   0x6   :  { %s22_s10 = sshll.u32 %s642_s9, 4  ;;  %s643_s11 = smov 128   ;;  %s23_s10 = int_to_ptr.vmem [resolvable:$true] %s22_s10 }
   0x7   :  { %s644_s12 = smov 8   ;;  %s48_s14 = sshll.u32 %s744_s4, 4  ;;  %s49_s14 = int_to_ptr.hbm [resolvable:$true] %s48_s14 }
   0x8   :  { %28 = dma.hbm_to_vmem [thread:$0]  %s21_s8, 256, %s23_s10, [#allocation5], %s643_s11, %s643_s11, %s644_s12  }
   0x9   :  { %s645_s15 = smov [#allocation9]   ;;  %s63_s18 = sshll.u32 %s746_s6, 4  ;;  %s64_s18 = int_to_ptr.hbm [resolvable:$true] %s63_s18 }
   0xa   :  { %s50_s16 = sshll.u32 %s645_s15, 4  ;;  %s646_s19 = smov 64   ;;  %s51_s16 = int_to_ptr.vmem [resolvable:$true] %s50_s16 }
   0xb   :  { %s647_s20 = smov 4   ;;  %s648_s21 = smov [#allocation10]  }
   0xc   :  { %56 = dma.hbm_to_vmem [thread:$0]  %s49_s14, 1024, %s51_s16, [#allocation8], %s646_s19, %s646_s19, %s647_s20  }
   0xd   :  { %s65_s22 = sshll.u32 %s648_s21, 4  ;;  %s66_s22 = int_to_ptr.vmem [resolvable:$true] %s65_s22 }
   0xe   :  { %71 = dma.hbm_to_vmem [thread:$0]  %s64_s18, 1024, %s66_s22, [#allocation11], %s646_s19, %s646_s19, %s647_s20  }
   0xf   :  { %633 = dma.done.wait [#allocation5], 256  }
  0x10   :  { %634 = vsyncadd [#allocation5], 4294967040 }
  0x11   :  { %635 = dma.done.wait [#allocation8], 1040  }
  0x12   :  { %636 = vsyncadd [#allocation8], 4294966256 }
  0x13   :  { %637 = dma.done.wait [#allocation11], 1024  }
  0x14   :  { %638 = vsyncadd [#allocation11], 4294966272  ;;  %v705_v0 = vld [vmem:[#allocation4] sm:$0xff]  ;;  %v708_v1 = vld [vmem:[#allocation4 + $0x8] sm:$0xff]  ;;  %v102_v2 = vlaneseq  ;;  %s649_s26 = smov [#allocation12]   ;;  %s387_s29 = sshll.u32 %s747_s7, 4  ;;  %s388_s29 = int_to_ptr.hbm [resolvable:$true] %s387_s29 }
  0x15   :  { %94 = vadd.xlane.f32.xlu0 %v705_v0  ;;  %v478_v16 = vld [vmem:[#allocation9 + $0x38] sm:$0xff]  ;;  %v477_v20 = vld [vmem:[#allocation9 + $0x30] sm:$0xff]  ;;  %v476_v23 = vld [vmem:[#allocation9 + $0x28] sm:$0xff]  ;;  %s385_s27 = sshll.u32 %s649_s26, 4  ;;  %s386_s27 = int_to_ptr.vmem [resolvable:$true] %s385_s27 }
  0x16   :  { %v103_v3 = vand.u32 127, %v102_v2  ;;  %269 = vmatpush.bf16.msra.mxu0 %v478_v16  ;;  %v475_v27 = vld [vmem:[#allocation9 + $0x20] sm:$0xff]  ;;  %v474_v30 = vld [vmem:[#allocation9 + $0x18] sm:$0xff]  ;;  %v473_v37 = vld [vmem:[#allocation9 + $0x10] sm:$0xff] }
  0x17   :  { %v472_v41 = vld [vmem:[#allocation9 + $0x8] sm:$0xff]  ;;  %v471_v45 = vld [vmem:[#allocation9] sm:$0xff]  ;;  %v486_v52 = vld [vmem:[#allocation10 + $0x38] sm:$0xff] }
  0x18   :  { %vm104_vm0 = vcmp.lt.s32.totalorder %v103_v3, 32  ;;  %352 = vmatpush.bf16.msra.mxu1 %v486_v52  ;;  %v485_v55 = vld [vmem:[#allocation10 + $0x30] sm:$0xff]  ;;  %v484_v61 = vld [vmem:[#allocation10 + $0x28] sm:$0xff]  ;;  %v502_v16 = vld [vmem:[%s742_s2] ss:$0 sm:$0xff] }
  0x1a   :  { %270 = vmatpush.bf16.msra.mxu0 %v477_v20 }
  0x1c   :  { %353 = vmatpush.bf16.msra.mxu1 %v485_v55 }
  0x1d   :  { %96 = vadd.xlane.f32.xlu0 %v708_v1 }
  0x1e   :  { %271 = vmatpush.bf16.msra.mxu0 %v476_v23  ;;  %v480_v23 = vld [vmem:[#allocation10 + $0x8] sm:$0xff] }
  0x20   :  { %354 = vmatpush.bf16.msra.mxu1 %v484_v61 }
  0x22   :  { %272 = vmatpush.bf16.msra.mxu0 %v475_v27 }
  0x26   :  { %273 = vmatpush.bf16.msra.mxu0 %v474_v30 }
  0x2a   :  { %274 = vmatpush.bf16.msra.mxu0 %v473_v37 }
  0x2e   :  { %275 = vmatpush.bf16.msra.mxu0 %v472_v41 }
  0x32   :  { %276 = vmatpush.bf16.msra.mxu0 %v471_v45 }
  0x88   :  { %v95_v4 = vpop.xlane.xlu0 %94 }
  0x89   :  { %v98_v5 = vmul.f32 0.03125, %v95_v4 }
  0x8b   :  { %v100_v6 = vsub.f32 %v705_v0, %v98_v5  ;;  %v483_v5 = vld [vmem:[#allocation10 + $0x20] sm:$0xff] }
  0x8c   :  { %355 = vmatpush.bf16.msra.mxu1 %v483_v5 }
  0x8d   :  { %v712_v7 = vsel %vm104_vm0, %v100_v6, 0.0 }
  0x8e   :  { %v107_v8 = vmul.f32 %v712_v7, %v712_v7 }
  0x90   :  { %109 = vadd.xlane.f32.xlu1 %v107_v8  ;;  %v97_v9 = vpop.xlane.xlu0 %96 }
  0x91   :  { %v99_v10 = vmul.f32 0.03125, %v97_v9  ;;  %v501_v9 = vld [vmem:[#allocation7] ss:$0 sm:$0xff] }
  0x93   :  { %v101_v11 = vsub.f32 %v708_v1, %v99_v10 }
  0x95   :  { %v717_v12 = vsel %vm104_vm0, %v101_v11, 0.0 }
  0x96   :  { %v108_v13 = vmul.f32 %v717_v12, %v717_v12 }
  0x98   :  { %111 = vadd.xlane.f32.xlu1 %v108_v13 }
 0x103   :  { %v110_v14 = vpop.xlane.xlu1 %109 }
 0x104   :  { %v113_v15 = vmul.f32 0.032258064, %v110_v14 }
 0x106   :  { %505 = vrsqrt.f32 %v113_v15  ;;  %vm122_vm1 = vcmp.eq.f32.partialorder %v113_v15, inf  ;;  %v125_v33 = vand.u32 2147483648, %v113_v15  ;;  %vm124_vm2 = vcmp.eq.f32.partialorder %v113_v15, 0.0 }
 0x10b   :  { %v112_v17 = vpop.xlane.xlu1 %111 }
 0x10c   :  { %v506_v18 = vpop.eup %505  ;;  %v114_v19 = vmul.f32 0.032258064, %v112_v17 }
 0x10d   :  { %v116_v21 = vmul.f32 %v506_v18, %v113_v15 }
 0x10e   :  { %507 = vrsqrt.f32 %v114_v19  ;;  %vm134_vm3 = vcmp.eq.f32.partialorder %v114_v19, inf  ;;  %v137_v43 = vand.u32 2147483648, %v114_v19  ;;  %vm136_vm4 = vcmp.eq.f32.partialorder %v114_v19, 0.0 }
 0x10f   :  { %v117_v22 = vmul.f32 %v506_v18, %v116_v21  ;;  %v482_v21 = vld [vmem:[#allocation10 + $0x18] sm:$0xff] }
 0x110   :  { %356 = vmatpush.bf16.msra.mxu1 %v482_v21 }
 0x111   :  { %v118_v24 = vmul.f32 0.5, %v117_v22  ;;  %v481_v22 = vld [vmem:[#allocation10 + $0x10] sm:$0xff] }
 0x113   :  { %v119_v25 = vsub.f32 1.5, %v118_v24  ;;  %v479_v24 = vld [vmem:[#allocation10] sm:$0xff] }
 0x114   :  { %v508_v26 = vpop.eup %507  ;;  %357 = vmatpush.bf16.msra.mxu1 %v481_v22 }
 0x115   :  { %v120_v28 = vmul.f32 %v506_v18, %v119_v25  ;;  %v128_v29 = vmul.f32 %v508_v26, %v114_v19  ;;  %v503_v25 = vld [vmem:[%s745_s5] ss:$0 sm:$0xff] }
 0x117   :  { %v121_v31 = vmul.f32 %v120_v28, %v113_v15  ;;  %v129_v32 = vmul.f32 %v508_v26, %v128_v29 }
 0x118   :  { %358 = vmatpush.bf16.msra.mxu1 %v480_v23 }
 0x119   :  { %v123_v34 = vsel %vm122_vm1, %v113_v15, %v121_v31  ;;  %v130_v35 = vmul.f32 0.5, %v129_v32  ;;  %v504_v32 = vld [vmem:[%s743_s3] ss:$0 sm:$0xff] }
 0x11a   :  { %v126_v36 = vsel %vm124_vm2, %v125_v33, %v123_v34 }
 0x11b   :  { %v139_v38 = vadd.f32 1e-06, %v126_v36  ;;  %v131_v39 = vsub.f32 1.5, %v130_v35 }
 0x11c   :  { %359 = vmatpush.bf16.msra.mxu1 %v479_v24 }
 0x11d   :  { %509 = vrcp.f32 %v139_v38  ;;  %v132_v40 = vmul.f32 %v508_v26, %v131_v39  ;;  %v152_v54 = vand.u32 2147483648, %v139_v38  ;;  %vm146_vm6 = vweird.f32 %v139_v38 }
 0x11e   :  { %v150_v56 = vand.u32 2147483647, %v139_v38 }
 0x11f   :  { %v133_v42 = vmul.f32 %v132_v40, %v114_v19  ;;  %v153_v60 = vor.u32 1.1754944e-38, %v152_v54 }
 0x120   :  { %vm151_vm8 = vcmp.eq.f32.partialorder %v150_v56, 8.507059e+37 }
 0x121   :  { %v135_v44 = vsel %vm134_vm3, %v114_v19, %v133_v42 }
 0x122   :  { %v138_v47 = vsel %vm136_vm4, %v137_v43, %v135_v44 }
 0x123   :  { %v510_v46 = vpop.eup %509  ;;  %v140_v49 = vadd.f32 1e-06, %v138_v47 }
 0x124   :  { %v142_v48 = vmul.f32 %v510_v46, %v139_v38  ;;  %vm147_vm5 = vweird.f32 %v510_v46 }
 0x125   :  { %511 = vrcp.f32 %v140_v49  ;;  %vm148_vm7 = vmor %vm146_vm6, %vm147_vm5  ;;  %v166_v2 = vand.u32 2147483648, %v140_v49  ;;  %v164_v4 = vand.u32 2147483647, %v140_v49  ;;  %vm160_vm10 = vweird.f32 %v140_v49 }
 0x126   :  { %v143_v50 = vsub.f32 1.0, %v142_v48 }
 0x127   :  { %v167_v10 = vor.u32 1.1754944e-38, %v166_v2  ;;  %vm165_vm12 = vcmp.eq.f32.partialorder %v164_v4, 8.507059e+37 }
 0x128   :  { %v144_v51 = vmul.f32 %v510_v46, %v143_v50 }
 0x12a   :  { %v145_v53 = vadd.f32 %v510_v46, %v144_v51 }
 0x12b   :  { %v512_v57 = vpop.eup %511 }
 0x12c   :  { %v149_v58 = vsel %vm148_vm7, %v510_v46, %v145_v53  ;;  %v156_v59 = vmul.f32 %v512_v57, %v140_v49  ;;  %vm161_vm9 = vweird.f32 %v512_v57 }
 0x12d   :  { %v154_v63 = vsel %vm151_vm8, %v153_v60, %v149_v58  ;;  %vm162_vm11 = vmor %vm160_vm10, %vm161_vm9 }
 0x12e   :  { %v157_v62 = vsub.f32 1.0, %v156_v59  ;;  %v170_v8 = vmul.f32 %v154_v63, %v712_v7 }
 0x130   :  { %v158_v3 = vmul.f32 %v512_v57, %v157_v62  ;;  %v175_v15 = vmul.f32 %v501_v9, %v170_v8 }
 0x132   :  { %v159_v6 = vadd.f32 %v512_v57, %v158_v3  ;;  %v181_v18 = vadd.f32 %v502_v16, %v175_v15 }
 0x134   :  { %v163_v11 = vsel %vm162_vm11, %v512_v57, %v159_v6 }
 0x135   :  { %v168_v13 = vsel %vm165_vm12, %v167_v10, %v163_v11 }
 0x136   :  { %v171_v14 = vmul.f32 %v168_v13, %v717_v12 }
 0x138   :  { %v176_v17 = vmul.f32 %v501_v9, %v171_v14 }
 0x13a   :  { %v182_v19 = vadd.f32 %v502_v16, %v176_v17 }
 0x13c   :  { %v490_v20 = vpack.c.bf16 %v182_v19, %v181_v18 }
 0x13e   :  { %491 = vst [vmem:[#allocation3] sm:$0xff] %v490_v20  }
 0x145   :  { %v470_v7 = vld [vmem:[#allocation3] sm:$0xff] }
 0x146   :  { %277 = vmatmul.bf16.vlgmr.msra.gmra.mxu0 %v470_v7 }
 0x1c3   :  { %v278_v12 = vpop.f32.mrf.mxu0 }
 0x1c4   :  { %v279_v26 = vadd.f32 %v503_v25, %v278_v12 }
 0x1c6   :  { %v283_v29 = vmax.f32 %v279_v26, 0.0 }
 0x1cb   :  { %v280_v27 = vpop.f32.mrf.mxu0 }
 0x1cc   :  { %v281_v28 = vadd.f32 %v503_v25, %v280_v27 }
 0x1ce   :  { %v284_v30 = vmax.f32 %v281_v28, 0.0 }
 0x1d0   :  { %v287_v31 = vpack.c.bf16 %v284_v30, %v283_v29 }
 0x1d2   :  { %360 = vmatmul.bf16.vlgmr.msra.gmra.mxu1 %v287_v31 }
 0x24f   :  { %v361_v33 = vpop.f32.mrf.mxu1 }
 0x250   :  { %v366_v34 = vadd.f32 %v504_v32, %v361_v33 }
 0x252   :  { %v377_v35 = vadd.f32 %v366_v34, %v705_v0 }
 0x254   :  { %379 = vst [vmem:[#allocation12] sm:$0xff] %v377_v35 }
 0x257   :  { %v363_v36 = vpop.f32.mrf.mxu1 }
 0x258   :  { %v367_v37 = vadd.f32 %v504_v32, %v363_v36 }
 0x25a   :  { %v378_v38 = vadd.f32 %v367_v37, %v708_v1 }
 0x25c   :  { %380 = vst [vmem:[#allocation12 + $0x8] sm:$0xff] %v378_v38 }
 0x25d   :  { %393 = dma.vmem_to_hbm [thread:$0]  %s386_s27, 256, %s388_s29, [#allocation6], %s643_s11, %s643_s11, %s644_s12  }
 0x25e   :  { %639 = dma.done.wait [#allocation6], 256  }
 0x25f   :  { %640 = vsyncadd [#allocation6], 4294967040 }
 0x260   :  { %398 = vsyncpa [#allocation5], 1 }
 0x261   :  { %399 = vsyncpa [#allocation8], 1 }
 0x262   :  { %400 = vsyncpa [#allocation11], 1 }
 0x263   :  { %401 = vsyncpa [#allocation6], 1 }

</bundles_post_ra>
